<compile_context>
chip_gen: v7x
topology: tpu7x:2x2x1
jax: 0.10.0
libtpu: 0.0.40
codegen_flags: <defaults>
</compile_context>

<pallas_src>
import jax
import jax.numpy as jnp
from jax import lax
from jax.experimental import pallas as pl
from jax.experimental.pallas import tpu as pltpu

HIDDEN = 256
TM_MAX = 256  # batch-tile rows per grid step (multiple of 8; MXU-friendly)


def _round_up(x, m):
    return (x + m - 1) // m * m


def _critic_kernel(obs_ref, ac_ref, w1o_ref, w1a_ref, b1_ref,
                   w2_ref, b2_ref, w3r_ref, b3_ref, o_ref):
    # Matmul operands in bf16, accumulation in f32; elementwise (bias/ReLU) in f32.
    obs = obs_ref[...].astype(jnp.bfloat16)
    ac = ac_ref[...].astype(jnp.bfloat16)

    # fc1 without materializing concat([obs, ac]):
    h1 = jnp.dot(obs, w1o_ref[...], preferred_element_type=jnp.float32)
    h1 = h1 + jnp.dot(ac, w1a_ref[...], preferred_element_type=jnp.float32)
    h1 = jnp.maximum(h1 + b1_ref[...], 0.0)                      # (TM, 256) f32

    # fc2
    h2 = jnp.dot(h1.astype(jnp.bfloat16), w2_ref[...],
                 preferred_element_type=jnp.float32)
    h2 = jnp.maximum(h2 + b2_ref[...], 0.0)                      # (TM, 256) f32

    # fc3 (out_features = 1): contract over hidden with w3 replicated on 8 sublanes
    # -> lane-dense (8, TM) result block; row 0 is q, stored unmasked.
    q8 = lax.dot_general(w3r_ref[...], h2.astype(jnp.bfloat16),
                         (((1,), (1,)), ((), ())),
                         preferred_element_type=jnp.float32)     # (8, TM)
    o_ref[...] = q8 + b3_ref[...]


def critic_forward(obs, ac, params):
    """Pallas forward pass of Critic. Returns shape (B,) float32."""
    w1, b1, w2, b2, w3, b3 = params
    obs = obs.astype(jnp.float32)
    ac = ac.astype(jnp.float32)
    B, obs_dim = obs.shape
    ac_dim = ac.shape[1]

    # Batch tiling (pad so TM divides B_pad).
    TM = TM_MAX if B >= TM_MAX else _round_up(B, 8)
    B_pad = _round_up(B, TM)
    if B_pad != B:
        obs = jnp.pad(obs, ((0, B_pad - B), (0, 0)))
        ac = jnp.pad(ac, ((0, B_pad - B), (0, 0)))
    num_tiles = B_pad // TM

    # Split W1 (removes the need for a concatenated input); pre-cast MXU operands
    # to bf16 once. Biases stay f32. w3 is replicated to 8 rows for a lane-dense out.
    w1o = w1[:obs_dim].astype(jnp.bfloat16)                # (obs_dim, 256)
    w1a = w1[obs_dim:].astype(jnp.bfloat16)                # (ac_dim, 256)
    w2b = w2.astype(jnp.bfloat16)                          # (256, 256)
    w3r = jnp.tile(w3.reshape(1, HIDDEN), (8, 1)).astype(jnp.bfloat16)  # (8, 256)

    resident = lambda shape: pl.BlockSpec(shape, lambda i: (0, 0))

    weight_bytes = 2 * (w1o.size + w1a.size + w2b.size + w3r.size) \
        + 4 * (b1.size + b2.size + b3.size)
    cost = pl.CostEstimate(
        flops=2 * B_pad * ((obs_dim + ac_dim) * HIDDEN + HIDDEN * HIDDEN + HIDDEN * 8),
        transcendentals=0,
        bytes_accessed=B_pad * (obs_dim + ac_dim) * 4 + 8 * B_pad * 4 + weight_bytes,
    )

    out = pl.pallas_call(
        _critic_kernel,
        out_shape=jax.ShapeDtypeStruct((8, B_pad), jnp.float32),
        grid_spec=pltpu.PrefetchScalarGridSpec(
            num_scalar_prefetch=0,
            grid=(num_tiles,),
            in_specs=[
                pl.BlockSpec((TM, obs_dim), lambda i: (i, 0)),   # streamed
                pl.BlockSpec((TM, ac_dim), lambda i: (i, 0)),    # streamed
                resident(w1o.shape), resident(w1a.shape), resident(b1.shape),
                resident(w2b.shape), resident(b2.shape),
                resident(w3r.shape), resident(b3.shape),
            ],
            out_specs=pl.BlockSpec((8, TM), lambda i: (0, i)),   # lane-dense q row
        ),
        compiler_params=pltpu.CompilerParams(
            dimension_semantics=("parallel",),
            vmem_limit_bytes=32 * 1024 * 1024,
        ),
        cost_estimate=cost,
    )(obs, ac, w1o, w1a, b1, w2b, b2, w3r, b3)

    return out[0, :B]


def init_critic_params(key, obs_dim, ac_dim):
    """Deterministic init mimicking nn.Linear's default U(-1/sqrt(fan_in), 1/sqrt(fan_in))."""
    in_dim = obs_dim + ac_dim

    def linear(key, fan_in, fan_out):
        kw, kb = jax.random.split(key)
        bound = 1.0 / jnp.sqrt(fan_in)
        w = jax.random.uniform(kw, (fan_in, fan_out), jnp.float32, -bound, bound)
        b = jax.random.uniform(kb, (1, fan_out), jnp.float32, -bound, bound)
        return w, b

    k1, k2, k3 = jax.random.split(key, 3)
    w1, b1 = linear(k1, in_dim, HIDDEN)
    w2, b2 = linear(k2, HIDDEN, HIDDEN)
    w3, b3 = linear(k3, HIDDEN, 1)
    return (w1, b1, w2, b2, w3, b3)


def _reference_forward(obs, ac, params):
    """Pure-JAX f32 reference matching the PyTorch module."""
    w1, b1, w2, b2, w3, b3 = params
    x = jnp.concatenate([obs, ac], axis=-1)
    x = jnp.maximum(x @ w1 + b1, 0.0)
    x = jnp.maximum(x @ w2 + b2, 0.0)
    x = x @ w3 + b3
    return jnp.squeeze(x, -1)


if __name__ == "__main__":
    key = jax.random.PRNGKey(0)
    k_obs, k_ac, k_params = jax.random.split(key, 3)

    B, OBS_DIM, AC_DIM = 8, 16, 8
    obs = jax.random.normal(k_obs, (B, OBS_DIM), jnp.float32)
    ac = jax.random.normal(k_ac, (B, AC_DIM), jnp.float32)

    params = init_critic_params(k_params, OBS_DIM, AC_DIM)

    q = critic_forward(obs, ac, params)
    jax.block_until_ready(q)

    q_ref = _reference_forward(obs, ac, params)
    assert q.shape == (B,), q.shape
    # bf16 matmul operands (f32 accumulation) -> relaxed tolerance vs. the f32 reference.
    assert jnp.allclose(q, q_ref, atol=5e-2, rtol=5e-2), (q, q_ref)

    print("KERNEL_OK")
</pallas_src>

<mosaic_0001>
module attributes {stable_mosaic.version = 11 : i64} {
  func.func @_critic_kernel(%arg0: i32, %arg1: memref<8x16xf32, #tpu.memory_space<vmem>>, %arg2: memref<8x8xf32, #tpu.memory_space<vmem>>, %arg3: memref<16x256xbf16, #tpu.memory_space<vmem>>, %arg4: memref<8x256xbf16, #tpu.memory_space<vmem>>, %arg5: memref<1x256xf32, #tpu.memory_space<vmem>>, %arg6: memref<256x256xbf16, #tpu.memory_space<vmem>>, %arg7: memref<1x256xf32, #tpu.memory_space<vmem>>, %arg8: memref<8x256xbf16, #tpu.memory_space<vmem>>, %arg9: memref<1x1xf32, #tpu.memory_space<vmem>>, %arg10: memref<8x8xf32, #tpu.memory_space<vmem>>) attributes {dimension_semantics = [#tpu.dimension_semantics<parallel>], iteration_bounds = array<i64: 1>, scalar_prefetch = 0 : i64, scratch_operands = 0 : i64, tpu.core_type = #tpu.core_type<tc>, window_params = [{transform_indices = @transform_0, window_bounds = array<i64: 8, 16>}, {transform_indices = @transform_1, window_bounds = array<i64: 8, 8>}, {pipeline_mode = #tpu.pipeline_mode<synchronous>, transform_indices = @transform_2, window_bounds = array<i64: 16, 256>}, {pipeline_mode = #tpu.pipeline_mode<synchronous>, transform_indices = @transform_3, window_bounds = array<i64: 8, 256>}, {pipeline_mode = #tpu.pipeline_mode<synchronous>, transform_indices = @transform_4, window_bounds = array<i64: 1, 256>}, {pipeline_mode = #tpu.pipeline_mode<synchronous>, transform_indices = @transform_5, window_bounds = array<i64: 256, 256>}, {pipeline_mode = #tpu.pipeline_mode<synchronous>, transform_indices = @transform_6, window_bounds = array<i64: 1, 256>}, {pipeline_mode = #tpu.pipeline_mode<synchronous>, transform_indices = @transform_7, window_bounds = array<i64: 8, 256>}, {pipeline_mode = #tpu.pipeline_mode<synchronous>, transform_indices = @transform_8, window_bounds = array<i64: 1, 1>}, {transform_indices = @transform_9, window_bounds = array<i64: 8, 8>}]} {
    %c0 = arith.constant 0 : index
    %c0_0 = arith.constant 0 : index
    %0 = vector.load %arg1[%c0, %c0_0] : memref<8x16xf32, #tpu.memory_space<vmem>>, vector<8x16xf32>
    %1 = arith.truncf %0 : vector<8x16xf32> to vector<8x16xbf16>
    %c0_1 = arith.constant 0 : index
    %c0_2 = arith.constant 0 : index
    %2 = vector.load %arg2[%c0_1, %c0_2] : memref<8x8xf32, #tpu.memory_space<vmem>>, vector<8x8xf32>
    %3 = arith.truncf %2 : vector<8x8xf32> to vector<8x8xbf16>
    %c0_3 = arith.constant 0 : index
    %c0_4 = arith.constant 0 : index
    %4 = vector.load %arg3[%c0_3, %c0_4] : memref<16x256xbf16, #tpu.memory_space<vmem>>, vector<16x256xbf16>
    %cst = arith.constant dense<0.000000e+00> : vector<8x256xf32>
    %5 = tpu.matmul %1, %4, %cst {dimension_numbers = #tpu.dot_dimension_numbers<[1], [0], [0], [1], [0, 0, 1, 1], [], []>} : vector<8x16xbf16>, vector<16x256xbf16>, vector<8x256xf32> -> vector<8x256xf32>
    %c0_5 = arith.constant 0 : index
    %c0_6 = arith.constant 0 : index
    %6 = vector.load %arg4[%c0_5, %c0_6] : memref<8x256xbf16, #tpu.memory_space<vmem>>, vector<8x256xbf16>
    %cst_7 = arith.constant dense<0.000000e+00> : vector<8x256xf32>
    %7 = tpu.matmul %3, %6, %cst_7 {dimension_numbers = #tpu.dot_dimension_numbers<[1], [0], [0], [1], [0, 0, 1, 1], [], []>} : vector<8x8xbf16>, vector<8x256xbf16>, vector<8x256xf32> -> vector<8x256xf32>
    %8 = arith.addf %5, %7 : vector<8x256xf32>
    %c0_8 = arith.constant 0 : index
    %c0_9 = arith.constant 0 : index
    %9 = vector.load %arg5[%c0_8, %c0_9] : memref<1x256xf32, #tpu.memory_space<vmem>>, vector<1x256xf32>
    %10 = vector.broadcast %9 : vector<1x256xf32> to vector<8x256xf32>
    %11 = arith.addf %8, %10 : vector<8x256xf32>
    %cst_10 = arith.constant 0.000000e+00 : f32
    %12 = vector.broadcast %cst_10 : f32 to vector<8x256xf32>
    %13 = arith.maximumf %11, %12 : vector<8x256xf32>
    %14 = arith.truncf %13 : vector<8x256xf32> to vector<8x256xbf16>
    %c0_11 = arith.constant 0 : index
    %c0_12 = arith.constant 0 : index
    %15 = vector.load %arg6[%c0_11, %c0_12] : memref<256x256xbf16, #tpu.memory_space<vmem>>, vector<256x256xbf16>
    %cst_13 = arith.constant dense<0.000000e+00> : vector<8x256xf32>
    %16 = tpu.matmul %14, %15, %cst_13 {dimension_numbers = #tpu.dot_dimension_numbers<[1], [0], [0], [1], [0, 0, 1, 1], [], []>} : vector<8x256xbf16>, vector<256x256xbf16>, vector<8x256xf32> -> vector<8x256xf32>
    %c0_14 = arith.constant 0 : index
    %c0_15 = arith.constant 0 : index
    %17 = vector.load %arg7[%c0_14, %c0_15] : memref<1x256xf32, #tpu.memory_space<vmem>>, vector<1x256xf32>
    %18 = vector.broadcast %17 : vector<1x256xf32> to vector<8x256xf32>
    %19 = arith.addf %16, %18 : vector<8x256xf32>
    %cst_16 = arith.constant 0.000000e+00 : f32
    %20 = vector.broadcast %cst_16 : f32 to vector<8x256xf32>
    %21 = arith.maximumf %19, %20 : vector<8x256xf32>
    %c0_17 = arith.constant 0 : index
    %c0_18 = arith.constant 0 : index
    %22 = vector.load %arg8[%c0_17, %c0_18] : memref<8x256xbf16, #tpu.memory_space<vmem>>, vector<8x256xbf16>
    %23 = arith.truncf %21 : vector<8x256xf32> to vector<8x256xbf16>
    %cst_19 = arith.constant dense<0.000000e+00> : vector<8x8xf32>
    %24 = tpu.matmul %22, %23, %cst_19 {dimension_numbers = #tpu.dot_dimension_numbers<[1], [1], [0], [0], [0, 0, 1, 0], [], []>} : vector<8x256xbf16>, vector<8x256xbf16>, vector<8x8xf32> -> vector<8x8xf32>
    %c0_20 = arith.constant 0 : index
    %c0_21 = arith.constant 0 : index
    %25 = vector.load %arg9[%c0_20, %c0_21] : memref<1x1xf32, #tpu.memory_space<vmem>>, vector<1x1xf32>
    %26 = vector.broadcast %25 : vector<1x1xf32> to vector<8x8xf32>
    %27 = arith.addf %24, %26 : vector<8x8xf32>
    %c0_22 = arith.constant 0 : index
    %c0_23 = arith.constant 0 : index
    %28 = vector.load %arg10[%c0_22, %c0_23] : memref<8x8xf32, #tpu.memory_space<vmem>>, vector<8x8xf32>
    tpu.vector_store %arg10[%c0_22, %c0_23], %27 {strides = array<i32>} : memref<8x8xf32, #tpu.memory_space<vmem>>, vector<8x8xf32>,
    return
  }
  func.func @transform_0(%arg0: i32) -> (i32, i32) {
    %c0_i32 = arith.constant 0 : i32
    %c0_i32_0 = arith.constant 0 : i32
    return %arg0, %c0_i32 : i32, i32
  }
  func.func @transform_1(%arg0: i32) -> (i32, i32) {
    %c0_i32 = arith.constant 0 : i32
    %c0_i32_0 = arith.constant 0 : i32
    return %arg0, %c0_i32 : i32, i32
  }
  func.func @transform_2(%arg0: i32) -> (i32, i32) {
    %c0_i32 = arith.constant 0 : i32
    %c0_i32_0 = arith.constant 0 : i32
    %c0_i32_1 = arith.constant 0 : i32
    return %c0_i32, %c0_i32_0 : i32, i32
  }
  func.func @transform_3(%arg0: i32) -> (i32, i32) {
    %c0_i32 = arith.constant 0 : i32
    %c0_i32_0 = arith.constant 0 : i32
    %c0_i32_1 = arith.constant 0 : i32
    return %c0_i32, %c0_i32_0 : i32, i32
  }
  func.func @transform_4(%arg0: i32) -> (i32, i32) {
    %c0_i32 = arith.constant 0 : i32
    %c0_i32_0 = arith.constant 0 : i32
    %c0_i32_1 = arith.constant 0 : i32
    return %c0_i32, %c0_i32_0 : i32, i32
  }
  func.func @transform_5(%arg0: i32) -> (i32, i32) {
    %c0_i32 = arith.constant 0 : i32
    %c0_i32_0 = arith.constant 0 : i32
    %c0_i32_1 = arith.constant 0 : i32
    return %c0_i32, %c0_i32_0 : i32, i32
  }
  func.func @transform_6(%arg0: i32) -> (i32, i32) {
    %c0_i32 = arith.constant 0 : i32
    %c0_i32_0 = arith.constant 0 : i32
    %c0_i32_1 = arith.constant 0 : i32
    return %c0_i32, %c0_i32_0 : i32, i32
  }
  func.func @transform_7(%arg0: i32) -> (i32, i32) {
    %c0_i32 = arith.constant 0 : i32
    %c0_i32_0 = arith.constant 0 : i32
    %c0_i32_1 = arith.constant 0 : i32
    return %c0_i32, %c0_i32_0 : i32, i32
  }
  func.func @transform_8(%arg0: i32) -> (i32, i32) {
    %c0_i32 = arith.constant 0 : i32
    %c0_i32_0 = arith.constant 0 : i32
    %c0_i32_1 = arith.constant 0 : i32
    return %c0_i32, %c0_i32_0 : i32, i32
  }
  func.func @transform_9(%arg0: i32) -> (i32, i32) {
    %c0_i32 = arith.constant 0 : i32
    %c0_i32_0 = arith.constant 0 : i32
    return %c0_i32, %arg0 : i32, i32
  }
}

</mosaic_0001>

<bundles_post_ra>
// kernel: tpu_custom_call.1
= control target key start
LH: loop header
LB: loop body
LE: loop exit
PB: predicated region body
PF: predicated region fallthrough
CT: control target
= control target key end

     0   :  { %s908_s0 = inlined_call_operand.hbm [shape: f32[8,16], index: 0, kind: input, shape index: {}]   ;;  %s909_s1 = inlined_call_operand.hbm [shape: f32[8,8], index: 1, kind: input, shape index: {}]   ;;  %s910_s2 = inlined_call_operand.hbm [shape: bf16[16,256], index: 2, kind: input, shape index: {}]   ;;  %s911_s3 = inlined_call_operand.vmem [shape: bf16[8,256], index: 3, kind: input, shape index: {}]   ;;  %s912_s4 = inlined_call_operand.vmem [shape: f32[1,256], index: 4, kind: input, shape index: {}]   ;;  %s913_s5 = inlined_call_operand.hbm [shape: bf16[256,256], index: 5, kind: input, shape index: {}]   ;;  %s914_s6 = inlined_call_operand.vmem [shape: f32[1,256], index: 6, kind: input, shape index: {}]   ;;  %s915_s7 = inlined_call_operand.vmem [shape: bf16[8,256], index: 7, kind: input, shape index: {}]   ;;  %s916_s8 = inlined_call_operand.<no memory space> [shape: f32[1,1], index: 8, kind: input, shape index: {}]   ;;  %s917_s9 = inlined_call_operand.hbm [shape: f32[8,8], index: 9, kind: output, shape index: {}]  }
   0x1   :  { %v14_v0 = vstv %s916_s8 }
   0x2   :  { %15 = vst [vmem:[#allocation2] sm:$0x1] %v14_v0 }
   0x3   :  { %16 = vsyncpa [#allocation4], 0 }
   0x4   :  { %17 = vsyncpa [#allocation7], 0 }
   0x5   :  { %18 = vsyncpa [#allocation10], 0 }
   0x6   :  { %19 = vsyncpa [#allocation5], 0  ;;  %s773_s11 = smov [#allocation6]   ;;  %s774_s13 = smov [#allocation3]  }
   0x7   :  { %s36_s12 = sshll.u32 %s773_s11, 4  ;;  %s26_s14 = sshll.u32 %s774_s13, 4  ;;  %s37_s12 = int_to_ptr.vmem [resolvable:$true] %s36_s12  ;;  %s27_s14 = int_to_ptr.vmem [resolvable:$true] %s26_s14 }
   0x8   :  { %s655_s17 = scalar_lea.hbm %s909_s1, 128 }
   0x9   :  { %p656_p0 = scmp.ne.s32.totalorder %s909_s1, %s655_s17  ;;  %p659_p1 = scmp.lt.u32.totalorder %s655_s17, %s909_s1 }
   0xb   :  { %p661_p2 = pnand %p659_p1, %p656_p0 }
   0xd   :  { %664 = shalt.err (!%p661_p2)
}
   0xe   :  { %s665_s21 = scalar_lea.vmem %s37_s12, 128  ;;  %p670_p4 = scmp.lt.s32.totalorder %s37_s12, %s37_s12 }
   0xf   :  { %p666_p3 = scmp.ne.s32.totalorder %s37_s12, %s665_s21  ;;  %p671_p5 = scmp.lt.s32.totalorder %s665_s21, %s665_s21 }
  0x11   :  { %p672_p6 = por %p671_p5, %p670_p4 }
  0x13   :  { %p673_p7 = pnand %p672_p6, %p666_p3 }
  0x15   :  { %676 = shalt.err (!%p673_p7)
}
  0x16   :  { %39 = dma.hbm_to_vmem [thread:$0]  %s909_s1, 128, %s37_s12, [#allocation7]  }
  0x17   :  { %s677_s26 = scalar_lea.hbm %s908_s0, 128 }
  0x18   :  { %p678_p8 = scmp.ne.s32.totalorder %s908_s0, %s677_s26  ;;  %p681_p9 = scmp.lt.u32.totalorder %s677_s26, %s908_s0 }
  0x1a   :  { %p683_p10 = pnand %p681_p9, %p678_p8 }
  0x1c   :  { %686 = shalt.err (!%p683_p10)
}
  0x1d   :  { %s687_s10 = scalar_lea.vmem %s27_s14, 128  ;;  %p692_p12 = scmp.lt.s32.totalorder %s27_s14, %s27_s14 }
  0x1e   :  { %p688_p11 = scmp.ne.s32.totalorder %s27_s14, %s687_s10  ;;  %p693_p13 = scmp.lt.s32.totalorder %s687_s10, %s687_s10 }
  0x20   :  { %p694_p0 = por %p693_p13, %p692_p12 }
  0x22   :  { %p695_p1 = pnand %p694_p0, %p688_p11 }
  0x24   :  { %698 = shalt.err (!%p695_p1)
}
  0x25   :  { %29 = dma.hbm_to_vmem [thread:$0]  %s908_s0, 128, %s27_s14, [#allocation4]  }
  0x26   :  { %s775_s12 = smov [#allocation8]   ;;  %s699_s17 = scalar_lea.hbm %s910_s2, 256 }
  0x27   :  { %s45_s13 = sshll.u32 %s775_s12, 4  ;;  %p700_p2 = scmp.ne.s32.totalorder %s910_s2, %s699_s17  ;;  %s46_s13 = int_to_ptr.vmem [resolvable:$true] %s45_s13 }
  0x28   :  { %p703_p3 = scmp.lt.u32.totalorder %s699_s17, %s910_s2 }
  0x2a   :  { %p705_p4 = pnand %p703_p3, %p700_p2 }
  0x2c   :  { %708 = shalt.err (!%p705_p4)
}
  0x2d   :  { %s709_s21 = scalar_lea.vmem %s46_s13, 256  ;;  %p714_p6 = scmp.lt.s32.totalorder %s46_s13, %s46_s13 }
  0x2e   :  { %p710_p5 = scmp.ne.s32.totalorder %s46_s13, %s709_s21  ;;  %p715_p7 = scmp.lt.s32.totalorder %s709_s21, %s709_s21 }
  0x30   :  { %p716_p8 = por %p715_p7, %p714_p6 }
  0x32   :  { %p717_p9 = pnand %p716_p8, %p710_p5 }
  0x34   :  { %720 = shalt.err (!%p717_p9)
}
  0x35   :  { %s776_s0 = smov 128   ;;  %s777_s14 = smov 8  }
  0x36   :  { %51 = dma.hbm_to_vmem [thread:$0]  %s910_s2, 256, %s46_s13, [#allocation7], %s776_s0, %s776_s0, %s777_s14  }
  0x37   :  { %s778_s24 = smov [#allocation9]   ;;  %s721_s28 = scalar_lea.hbm %s913_s5, 4096 }
  0x38   :  { %s61_s25 = sshll.u32 %s778_s24, 4  ;;  %p722_p10 = scmp.ne.s32.totalorder %s913_s5, %s721_s28  ;;  %s62_s25 = int_to_ptr.vmem [resolvable:$true] %s61_s25 }
  0x39   :  { %p725_p11 = scmp.lt.u32.totalorder %s721_s28, %s913_s5 }
  0x3b   :  { %p727_p12 = pnand %p725_p11, %p722_p10 }
  0x3d   :  { %730 = shalt.err (!%p727_p12)
}
  0x3e   :  { %s731_s11 = scalar_lea.vmem %s62_s25, 4096  ;;  %p736_p0 = scmp.lt.s32.totalorder %s62_s25, %s62_s25 }
  0x3f   :  { %p732_p13 = scmp.ne.s32.totalorder %s62_s25, %s731_s11  ;;  %p737_p1 = scmp.lt.s32.totalorder %s731_s11, %s731_s11 }
  0x41   :  { %p738_p2 = por %p737_p1, %p736_p0 }
  0x43   :  { %p739_p3 = pnand %p738_p2, %p732_p13 }
  0x45   :  { %742 = shalt.err (!%p739_p3)
}
  0x46   :  { %67 = dma.hbm_to_vmem [thread:$0]  %s913_s5, 4096, %s62_s25, [#allocation10], %s776_s0, %s776_s0, %s777_s14  }
  0x47   :  { %765 = dma.done.wait [#allocation4], 128  }
  0x48   :  { %766 = vsyncadd [#allocation4], 4294967168 }
  0x49   :  { %767 = dma.done.wait [#allocation7], 384  }
  0x4a   :  { %768 = vsyncadd [#allocation7], 4294966912 }
  0x4b   :  { %769 = dma.done.wait [#allocation10], 4096  }
  0x4c   :  { %770 = vsyncadd [#allocation10], 4294963200  ;;  %v779_v1 = vmov 0   ;;  %v93_v2 = vld [vmem:[%s911_s3] sm:$0xff]  ;;  %vm103_vm0 = vcmask 1043456   ;;  %v89_v3 = vld [vmem:[#allocation6] sm:$0xff]  ;;  %v208_v44 = vlaneseq }
  0x4d   :  { %142 = vmatprep.mubr.bf16.mxu1 %v779_v1  ;;  %599 = vset.pattern.permute.xlu0 %v779_v1  ;;  %v550_v4 = vcombine.high %v93_v2, %v93_v2  ;;  %v549_v5 = vcombine.low %v93_v2, %v93_v2  ;;  %v604_v6 = vld [vmem:[#allocation8 + $0x4] ss:$8 sps:$4 sm:$0xff]   ;;  %v90_v8 = vpack.c.bf16 %v89_v3, %v89_v3  ;;  %v605_v9 = vld [vmem:[#allocation9 + $0x4] ss:$8 sps:$4 sm:$0xff]   ;;  %v607_v10 = vld [vmem:[#allocation9] ss:$8 sps:$4 sm:$0xff]  }
  0x4e   :  { %vm99_vm1 = vcmask 64512   ;;  %v602_v11 = vld [vmem:[#allocation8] ss:$8 sps:$4 sm:$0xff]   ;;  %v608_v12 = vld [vmem:[#allocation9 + $0x14] ss:$8 sps:$4 sm:$0xff]   ;;  %428 = vmatprep.subr.bf16.mxu0 %v605_v9  ;;  %v87_v15 = vld [vmem:[#allocation3] sm:$0xff] }
  0x4f   :  { %551 = vmatprep.subr.msk.bf16.mxu1 %vm103_vm0, %v550_v4  ;;  %v105_v7 = vsel %vm103_vm0, %v549_v5, 0  ;;  %429 = vmatpush1.bf16.msra.mxu0 %v607_v10  ;;  %v610_v13 = vld [vmem:[#allocation9 + $0x10] ss:$8 sps:$4 sm:$0xff]   ;;  %v611_v14 = vld [vmem:[#allocation9 + $0x24] ss:$8 sps:$4 sm:$0xff]   ;;  %v88_v17 = vpack.c.bf16 %v87_v15, %v87_v15  ;;  %vm161_vm2 = vcmask 130048  }
  0x50   :  { %111 = vmatpush1.bf16.msra.mxu1 %v105_v7  ;;  %430 = vmatprep.subr.bf16.mxu0 %v608_v12  ;;  %v613_v16 = vld [vmem:[#allocation9 + $0x20] ss:$8 sps:$4 sm:$0xff]   ;;  %v614_v18 = vld [vmem:[#allocation9 + $0x34] ss:$8 sps:$4 sm:$0xff]   ;;  %v616_v19 = vld [vmem:[#allocation9 + $0x30] ss:$8 sps:$4 sm:$0xff]  }
  0x51   :  { %165 = vmatprep.subr.bf16.mxu1 %v604_v6  ;;  %v617_v20 = vld [vmem:[#allocation9 + $0x44] ss:$8 sps:$4 sm:$0xff]   ;;  %v619_v21 = vld [vmem:[#allocation9 + $0x40] ss:$8 sps:$4 sm:$0xff]   ;;  %v620_v22 = vld [vmem:[#allocation9 + $0x54] ss:$8 sps:$4 sm:$0xff]  }
  0x52   :  { %v622_v23 = vld [vmem:[#allocation9 + $0x50] ss:$8 sps:$4 sm:$0xff]   ;;  %v623_v24 = vld [vmem:[#allocation9 + $0x64] ss:$8 sps:$4 sm:$0xff]   ;;  %v625_v25 = vld [vmem:[#allocation9 + $0x60] ss:$8 sps:$4 sm:$0xff]  }
  0x53   :  { %552 = vmatmul.mubr.msk.bf16.vlgmr.msra.gmra.mrb[0].mxu1 %vm99_vm1, %v90_v8  ;;  %431 = vmatpush1.bf16.msra.mxu0 %v610_v13  ;;  %v626_v26 = vld [vmem:[#allocation9 + $0x74] ss:$8 sps:$4 sm:$0xff]   ;;  %v628_v27 = vld [vmem:[#allocation9 + $0x70] ss:$8 sps:$4 sm:$0xff]   ;;  %v629_v28 = vld [vmem:[#allocation9 + $0x84] ss:$8 sps:$4 sm:$0xff]  }
  0x54   :  { %166 = vmatpush1.bf16.msra.mxu1 %v602_v11  ;;  %197 = vmatprep.mubr.bf16.mxu1 %v779_v1  ;;  %v631_v29 = vld [vmem:[#allocation9 + $0x80] ss:$8 sps:$4 sm:$0xff]   ;;  %v632_v30 = vld [vmem:[#allocation9 + $0x94] ss:$8 sps:$4 sm:$0xff]   ;;  %v634_v31 = vld [vmem:[#allocation9 + $0x90] ss:$8 sps:$4 sm:$0xff]  }
  0x55   :  { %432 = vmatprep.subr.bf16.mxu0 %v611_v14  ;;  %v635_v32 = vld [vmem:[#allocation9 + $0xa4] ss:$8 sps:$4 sm:$0xff]   ;;  %v637_v33 = vld [vmem:[#allocation9 + $0xa0] ss:$8 sps:$4 sm:$0xff]   ;;  %v638_v34 = vld [vmem:[#allocation9 + $0xb4] ss:$8 sps:$4 sm:$0xff]  }
  0x56   :  { %v640_v35 = vld [vmem:[#allocation9 + $0xb0] ss:$8 sps:$4 sm:$0xff]   ;;  %v641_v36 = vld [vmem:[#allocation9 + $0xc4] ss:$8 sps:$4 sm:$0xff]   ;;  %v643_v37 = vld [vmem:[#allocation9 + $0xc0] ss:$8 sps:$4 sm:$0xff]  }
  0x57   :  { %433 = vmatpush1.bf16.msra.mxu0 %v613_v16  ;;  %v644_v38 = vld [vmem:[#allocation9 + $0xd4] ss:$8 sps:$4 sm:$0xff]   ;;  %v646_v39 = vld [vmem:[#allocation9 + $0xd0] ss:$8 sps:$4 sm:$0xff]   ;;  %v647_v40 = vld [vmem:[#allocation9 + $0xe4] ss:$8 sps:$4 sm:$0xff]  }
  0x58   :  { %434 = vmatprep.subr.bf16.mxu0 %v614_v18  ;;  %v649_v41 = vld [vmem:[#allocation9 + $0xe0] ss:$8 sps:$4 sm:$0xff]   ;;  %v650_v42 = vld [vmem:[#allocation9 + $0xf4] ss:$8 sps:$4 sm:$0xff]   ;;  %v652_v43 = vld [vmem:[#allocation9 + $0xf0] ss:$8 sps:$4 sm:$0xff]  }
  0x59   :  { %v209_v45 = vshrl.u32 %v208_v44, 7  ;;  %v206_v51 = vld [vmem:[%s912_s4] sm:$0x3] }
  0x5a   :  { %v471_v3 = vld [vmem:[%s915_s7] sm:$0xff]  ;;  %s780_s7 = smov [#allocation11]  }
  0x5b   :  { %555 = vmatmul.mubr.msk.bf16.vlgmr.msra.gmra.mrb[4].mxu1 %vm161_vm2, %v88_v17  ;;  %435 = vmatpush1.bf16.msra.mxu0 %v616_v19  ;;  %v210_v50 = vsub.s32 0, %v209_v45  ;;  %v214_v52 = vsub.s32 1, %v209_v45  ;;  %v590_v4 = vcombine.high %v471_v3, %v471_v3  ;;  %v588_v5 = vld [vmem:[#allocation2] ss:$0 sm:$0xff]  ;;  %v589_v19 = vcombine.low %v471_v3, %v471_v3  ;;  %s538_s19 = sshll.u32 %s780_s7, 4  ;;  %s539_s19 = int_to_ptr.vmem [resolvable:$true] %s538_s19 }
  0x5c   :  { %436 = vmatprep.subr.bf16.mxu0 %v617_v20  ;;  %481 = vperm.xlu0 %599, %v588_v5   ;;  %v256_v6 = vld [vmem:[%s914_s6] sm:$0x3]  ;;  %s743_s6 = scalar_lea.vmem %s539_s19, 128  ;;  %p748_p5 = scmp.lt.s32.totalorder %s539_s19, %s539_s19 }
  0x5d   :  { %v211_v53 = vrot.slane %v206_v51, %v210_v50  ;;  %v215_v55 = vrot.slane %v206_v51, %v214_v52  ;;  %523 = vmatprep.mubr.bf16.mxu1 %v590_v4  ;;  %v261_v7 = vrot.slane %v256_v6, %v210_v50  ;;  %v265_v8 = vrot.slane %v256_v6, %v214_v52  ;;  %p744_p4 = scmp.ne.s32.totalorder %s539_s19, %s743_s6  ;;  %p749_p6 = scmp.lt.s32.totalorder %s743_s6, %s743_s6 }
  0x5f   :  { %437 = vmatpush1.bf16.msra.mxu0 %v619_v21  ;;  %p750_p7 = por %p749_p6, %p748_p5 }
  0x60   :  { %438 = vmatprep.subr.bf16.mxu0 %v620_v22 }
  0x61   :  { %p751_p8 = pnand %p750_p7, %p744_p4 }
  0x63   :  { %439 = vmatpush1.bf16.msra.mxu0 %v622_v23 }
  0x64   :  { %440 = vmatprep.subr.bf16.mxu0 %v623_v24 }
  0x67   :  { %441 = vmatpush1.bf16.msra.mxu0 %v625_v25 }
  0x68   :  { %442 = vmatprep.subr.bf16.mxu0 %v626_v26 }
  0x6b   :  { %443 = vmatpush1.bf16.msra.mxu0 %v628_v27 }
  0x6c   :  { %444 = vmatprep.subr.bf16.mxu0 %v629_v28 }
  0x6f   :  { %445 = vmatpush1.bf16.msra.mxu0 %v631_v29 }
  0x70   :  { %446 = vmatprep.subr.bf16.mxu0 %v632_v30 }
  0x73   :  { %447 = vmatpush1.bf16.msra.mxu0 %v634_v31 }
  0x74   :  { %448 = vmatprep.subr.bf16.mxu0 %v635_v32 }
  0x77   :  { %449 = vmatpush1.bf16.msra.mxu0 %v637_v33 }
  0x78   :  { %450 = vmatprep.subr.bf16.mxu0 %v638_v34 }
  0x7b   :  { %451 = vmatpush1.bf16.msra.mxu0 %v640_v35 }
  0x7c   :  { %452 = vmatprep.subr.bf16.mxu0 %v641_v36 }
  0x7f   :  { %453 = vmatpush1.bf16.msra.mxu0 %v643_v37 }
  0x80   :  { %454 = vmatprep.subr.bf16.mxu0 %v644_v38 }
  0x83   :  { %455 = vmatpush1.bf16.msra.mxu0 %v646_v39 }
  0x84   :  { %456 = vmatprep.subr.bf16.mxu0 %v647_v40 }
  0x87   :  { %457 = vmatpush1.bf16.msra.mxu0 %v649_v41 }
  0x88   :  { %458 = vmatprep.subr.bf16.mxu0 %v650_v42 }
  0x8b   :  { %459 = vmatpush1.bf16.msra.mxu0 %v652_v43 }
  0xdb   :  { %v482_v20 = vpop.permute.xlu0 %481 }
 0x126   :  { %v144_v46 = vpop.f32.mrb[0].mxu1 }
 0x127   :  { %v146_v47 = vpop.f32.mrb[1].mxu1 }
 0x128   :  { %v148_v48 = vpop.f32.mrb[2].mxu1 }
 0x129   :  { %v149_v49 = vpop.f32.mrb[3].mxu1 }
 0x12e   :  { %v199_v54 = vpop.f32.mrb[4].mxu1 }
 0x12f   :  { %v200_v56 = vadd.f32 %v199_v54, %v144_v46  ;;  %v201_v57 = vpop.f32.mrb[5].mxu1 }
 0x130   :  { %v202_v58 = vadd.f32 %v201_v57, %v146_v47  ;;  %v203_v59 = vpop.f32.mrb[6].mxu1 }
 0x131   :  { %v218_v60 = vadd.f32 %v211_v53, %v200_v56  ;;  %v204_v61 = vpop.f32.mrb[7].mxu1 }
 0x132   :  { %v219_v62 = vadd.f32 %v215_v55, %v202_v58 }
 0x133   :  { %v220_v63 = vmax.f32 %v218_v60, 0.0 }
 0x134   :  { %v221_v0 = vmax.f32 %v219_v62, 0.0 }
 0x135   :  { %v222_v2 = vpack.c.bf16 %v220_v63, %v220_v63 }
 0x136   :  { %v223_v1 = vpack.c.bf16 %v221_v0, %v221_v0 }
 0x138   :  { %460 = vmatprep.mubr.bf16.mxu0 %v223_v1 }
 0x139   :  { %461 = vmatmul.mubr.bf16.vlgmr.msra.gmra.mrb[0].mxu0 %v222_v2 }
 0x20c   :  { %v462_v9 = vpop.f32.mrb[0].mxu0 }
 0x20d   :  { %v463_v10 = vadd.f32 %v462_v9, %v261_v7  ;;  %v464_v11 = vpop.f32.mrb[1].mxu0 }
 0x20e   :  { %v465_v12 = vadd.f32 %v464_v11, %v265_v8  ;;  %v466_v13 = vpop.f32.mrb[2].mxu0 }
 0x20f   :  { %v469_v14 = vmax.f32 %v463_v10, 0.0  ;;  %v467_v15 = vpop.f32.mrb[3].mxu0 }
 0x210   :  { %v470_v16 = vmax.f32 %v465_v12, 0.0 }
 0x211   :  { %v472_v18 = vpack.c.bf16 %v469_v14, %v469_v14 }
 0x212   :  { %v473_v17 = vpack.c.bf16 %v470_v16, %v470_v16 }
 0x214   :  { %491 = vmatprep.subr.bf16.mxu1 %v473_v17 }
 0x215   :  { %492 = vmatpush1.bf16.xpose.msra.mxu1 %v472_v18 }
 0x21c   :  { %524 = vmatmul.mubr.bf16.vlgmr.msra.gmra.mrb[8].mxu1 %v589_v19 }
 0x2ef   :  { %v525_v21 = vpop.f32.mrb[8].mxu1 }
 0x2f0   :  { %v526_v22 = vadd.f32 %v525_v21, %v482_v20  ;;  %v527_v23 = vpop.f32.mrb[9].mxu1 }
 0x2f1   :  { %v528_v24 = vpop.f32.mrb[10].mxu1 }
 0x2f2   :  { %531 = vst.msk [vmem:[#allocation11] sm:$0xff] %vm99_vm1, %v526_v22  ;;  %v529_v25 = vpop.f32.mrb[11].mxu1 }
 0x2f3   :  { %754 = shalt.err (!%p751_p8)
}
 0x2f4   :  { %s755_s21 = scalar_lea.hbm %s917_s9, 128 }
 0x2f5   :  { %p756_p9 = scmp.ne.s32.totalorder %s917_s9, %s755_s21  ;;  %p759_p10 = scmp.lt.u32.totalorder %s755_s21, %s917_s9 }
 0x2f7   :  { %p761_p11 = pnand %p759_p10, %p756_p9 }
 0x2f9   :  { %764 = shalt.err (!%p761_p11)
}
 0x2fa   :  { %541 = dma.vmem_to_hbm [thread:$0]  %s539_s19, 128, %s917_s9, [#allocation5]  }
 0x2fb   :  { %771 = dma.done.wait [#allocation5], 128  }
 0x2fc   :  { %772 = vsyncadd [#allocation5], 4294967168 }
 0x2fd   :  { %545 = vsyncpa [#allocation4], 1 }
 0x2fe   :  { %546 = vsyncpa [#allocation7], 1 }
 0x2ff   :  { %547 = vsyncpa [#allocation10], 1 }
 0x300   :  { %548 = vsyncpa [#allocation5], 1 }

</bundles_post_ra>
